<compile_context>
chip_gen: v7x
topology: tpu7x:2x2x1
jax: 0.10.0
libtpu: 0.0.40
codegen_flags: <defaults>
</compile_context>

<pallas_src>
import functools

import jax
import jax.numpy as jnp
from jax.experimental import pallas as pl
from jax.experimental.pallas import tpu as pltpu


# ----------------------------------------------------------------------------
# Kernel body
# ----------------------------------------------------------------------------
def _fusion_kernel(x1_ref, x2_ref, w1_ref, w2_ref, db_ref, out_ref, *, use_mxu):
    x1 = x1_ref[0].astype(jnp.float32)            # (C, TS)  pixels on lanes
    x2 = x2_ref[0].astype(jnp.float32)

    if use_mxu:
        # Large C: (1, C) @ (C, TS) on the otherwise-idle MXU, f32 accumulate.
        dn = (((1,), (0,)), ((), ()))
        d = jax.lax.dot_general(w1_ref[...], x1, dn,
                                preferred_element_type=jnp.float32)
        d = d - jax.lax.dot_general(w2_ref[...], x2, dn,
                                    preferred_element_type=jnp.float32)
    else:
        # Small C: per-channel weighted reduction over sublanes (VPU/XLU).
        d = jnp.sum(x1 * w1_ref[...] - x2 * w2_ref[...], axis=0, keepdims=True)

    d = d + db_ref[0]                             # scalar bias diff from SMEM
    a1 = jax.nn.sigmoid(d)                        # softmax of 2 logits
    out_ref[0] = (x1 * a1 + x2 * (1.0 - a1)).astype(out_ref.dtype)


# ----------------------------------------------------------------------------
# Tiling / VMEM heuristics
# ----------------------------------------------------------------------------
_TARGET_BLOCK_BYTES = 4 * 1024 * 1024   # per-stream block; amortizes the
                                        # ~0.35us/step overhead even at v7x's
                                        # 3.2 TB/s, and is cheap on v5e/v6e.


def _round_up(x, m):
    return -(-x // m) * m


def _pick_pixel_tile(hw, c, itemsize, target_bytes=_TARGET_BLOCK_BYTES):
    """Fixed pixel tile (multiple of 128); the last grid block may be partial.

    Guarantees >= 2 pixel tiles whenever hw > 128 (v7x megacore / pipelining),
    and caps the per-stream block at ~target_bytes.
    """
    if hw <= 128:
        return hw                                  # block == full pixel axis
    ts = max(128, (target_bytes // max(1, c * itemsize)) // 128 * 128)
    ts = min(ts, _round_up(-(-hw // 2), 128))      # keep at least 2 tiles
    ts = min(ts, _round_up(hw, 128))               # never exceed padded hw
    return ts


def _vmem_limit_bytes(block_bytes, param_bytes):
    try:
        cap = int(pltpu.get_tpu_info().vmem_capacity_bytes)
    except Exception:                              # pragma: no cover
        cap = 64 * 1024 * 1024                     # conservative (v7x per-TC)
    # x1 / x2 / out double-buffered + weight tiles + Mosaic internal scratch.
    need = 6 * block_bytes + param_bytes + (2 << 20)
    # Leave ~8 MiB of headroom below physical VMEM; floor at 16 MiB.
    return int(max(16 << 20, min(need, cap - (8 << 20))))


# ----------------------------------------------------------------------------
# Public wrapper
# ----------------------------------------------------------------------------
def attentional_fusion(x1, x2, w1, w2, s1, b1, s2, b2, *, donate_x1=False):
    """x1, x2: (N, C, H, W).  w1, w2: (C,) 1x1-conv weights (out_channels=1).
    s*, b*: eval-mode-folded BatchNorm scale/bias scalars per branch.
    donate_x1=True aliases the output onto x1's HBM buffer (only if the caller
    does not reuse x1 afterwards)."""
    N, C, H, W = x1.shape
    HW = H * W
    x1f = x1.reshape(N, C, HW)                    # contiguous -> free reshape
    x2f = x2.reshape(N, C, HW)

    use_mxu = C >= 128

    # Fold BN scale into the conv weight; only the bias *difference* matters
    # because softmax over two logits depends only on (logit1 - logit2).
    w1s = jnp.asarray(w1, jnp.float32) * jnp.asarray(s1, jnp.float32)
    w2s = jnp.asarray(w2, jnp.float32) * jnp.asarray(s2, jnp.float32)
    if use_mxu:
        w1s = w1s.reshape(1, C)
        w2s = w2s.reshape(1, C)
        w_block = (1, C)
    else:
        w1s = w1s.reshape(C, 1)
        w2s = w2s.reshape(C, 1)
        w_block = (C, 1)
    db = (jnp.asarray(b1, jnp.float32) - jnp.asarray(b2, jnp.float32)).reshape(1)

    ts = _pick_pixel_tile(HW, C, x1.dtype.itemsize)
    grid = (N, pl.cdiv(HW, ts))                   # last pixel tile may be partial

    block_bytes = C * ts * x1.dtype.itemsize
    param_bytes = 2048 * C                        # padded weight tiles (generous)
    vmem_limit = _vmem_limit_bytes(block_bytes, param_bytes)

    kernel = functools.partial(_fusion_kernel, use_mxu=use_mxu)

    out = pl.pallas_call(
        kernel,
        out_shape=jax.ShapeDtypeStruct((N, C, HW), x1.dtype),
        grid_spec=pltpu.PrefetchScalarGridSpec(
            num_scalar_prefetch=0,
            grid=grid,
            in_specs=[
                pl.BlockSpec((1, C, ts), lambda n, p: (n, 0, p)),      # x1
                pl.BlockSpec((1, C, ts), lambda n, p: (n, 0, p)),      # x2
                pl.BlockSpec(w_block, lambda n, p: (0, 0)),            # w1*s1
                pl.BlockSpec(w_block, lambda n, p: (0, 0)),            # w2*s2
                pl.BlockSpec(memory_space=pltpu.MemorySpace.SMEM),     # b1-b2
            ],
            out_specs=pl.BlockSpec((1, C, ts), lambda n, p: (n, 0, p)),
        ),
        compiler_params=pltpu.CompilerParams(
            dimension_semantics=("parallel", "parallel"),
            vmem_limit_bytes=vmem_limit,
        ),
        input_output_aliases=({0: 0} if donate_x1 else {}),
    )(x1f, x2f, w1s, w2s, db)
    return out.reshape(N, C, H, W)


# ----------------------------------------------------------------------------
# Reference + BN folding helpers
# ----------------------------------------------------------------------------
def _fold_bn(gamma, beta, mean, var, eps=1e-3):
    # Module spec: BatchNorm2d(1, eps=0.001); conv has bias=False.
    scale = gamma / jnp.sqrt(var + eps)
    bias = beta - mean * scale
    return scale, bias


def _ref_forward(x1, x2, w1, w2, s1, b1, s2, b2):
    # Pure-JAX NCHW reference mirroring the PyTorch forward (eval-mode BN).
    x1f = x1.astype(jnp.float32)
    x2f = x2.astype(jnp.float32)
    l1 = jnp.einsum('nchw,c->nhw', x1f, w1,
                    precision=jax.lax.Precision.HIGHEST)[:, None] * s1 + b1
    l2 = jnp.einsum('nchw,c->nhw', x2f, w2,
                    precision=jax.lax.Precision.HIGHEST)[:, None] * s2 + b2
    aw = jax.nn.softmax(jnp.concatenate([l1, l2], axis=1), axis=1)
    return x1f * aw[:, 0:1] + x2f * aw[:, 1:2]


def _make_case(key, N, C, H, W, dtype):
    k = jax.random.split(key, 12)
    x1 = jax.random.normal(k[0], (N, C, H, W), jnp.float32)
    x2 = jax.random.normal(k[1], (N, C, H, W), jnp.float32)
    w1 = 0.5 * jax.random.normal(k[2], (C,), jnp.float32)
    w2 = 0.5 * jax.random.normal(k[3], (C,), jnp.float32)
    g1 = 1.0 + 0.1 * jax.random.normal(k[4], (), jnp.float32)
    be1 = 0.1 * jax.random.normal(k[5], (), jnp.float32)
    m1 = 0.05 * jax.random.normal(k[6], (), jnp.float32)
    v1 = 1.0 + 0.1 * jnp.abs(jax.random.normal(k[7], (), jnp.float32))
    g2 = 1.0 + 0.1 * jax.random.normal(k[8], (), jnp.float32)
    be2 = 0.1 * jax.random.normal(k[9], (), jnp.float32)
    m2 = 0.05 * jax.random.normal(k[10], (), jnp.float32)
    v2 = 1.0 + 0.1 * jnp.abs(jax.random.normal(k[11], (), jnp.float32))
    s1, b1 = _fold_bn(g1, be1, m1, v1)
    s2, b2 = _fold_bn(g2, be2, m2, v2)
    return x1.astype(dtype), x2.astype(dtype), w1, w2, s1, b1, s2, b2


if __name__ == "__main__":
    # TODO(synk): BatchNorm implemented in eval mode (folded running stats);
    # PyTorch default train-mode batch statistics are not reproduced.
    key = jax.random.PRNGKey(0)
    k_a, k_b, k_c = jax.random.split(key, 3)

    cases = [
        # (key, N, C, H, W, dtype, atol, rtol)   -- exercises:
        (k_a, 2, 4, 16, 16, jnp.float32, 1e-4, 1e-4),   # VPU path, even tiles
        (k_b, 1, 128, 15, 15, jnp.float32, 5e-4, 5e-4), # MXU path, partial tile, N=1
        (k_c, 2, 4, 16, 16, jnp.bfloat16, 3e-2, 3e-2),  # bf16 I/O, f32 math
    ]

    for (kk, N, C, H, W, dtype, atol, rtol) in cases:
        x1, x2, w1, w2, s1, b1, s2, b2 = _make_case(kk, N, C, H, W, dtype)
        out = attentional_fusion(x1, x2, w1, w2, s1, b1, s2, b2)
        out = jax.block_until_ready(out)
        ref = _ref_forward(x1, x2, w1, w2, s1, b1, s2, b2)
        assert out.shape == (N, C, H, W)
        err = float(jnp.max(jnp.abs(out.astype(jnp.float32) - ref)))
        assert jnp.allclose(out.astype(jnp.float32), ref, rtol=rtol, atol=atol), (
            (N, C, H, W, str(dtype), err))

    print("KERNEL_OK")
</pallas_src>

<mosaic_0001>
module attributes {stable_mosaic.version = 11 : i64} {
  func.func @_fusion_kernel(%arg0: i32, %arg1: i32, %arg2: memref<1x4x128xf32, #tpu.memory_space<vmem>>, %arg3: memref<1x4x128xf32, #tpu.memory_space<vmem>>, %arg4: memref<4x1xf32, #tpu.memory_space<vmem>>, %arg5: memref<4x1xf32, #tpu.memory_space<vmem>>, %arg6: memref<1xf32, #tpu.memory_space<smem>>, %arg7: memref<1x4x128xf32, #tpu.memory_space<vmem>>) attributes {dimension_semantics = [#tpu.dimension_semantics<parallel>, #tpu.dimension_semantics<parallel>], iteration_bounds = array<i64: 2, 2>, scalar_prefetch = 0 : i64, scratch_operands = 0 : i64, tpu.core_type = #tpu.core_type<tc>, window_params = [{transform_indices = @transform_0, window_bounds = array<i64: 1, 4, 128>}, {transform_indices = @transform_1, window_bounds = array<i64: 1, 4, 128>}, {pipeline_mode = #tpu.pipeline_mode<synchronous>, transform_indices = @transform_2, window_bounds = array<i64: 4, 1>}, {pipeline_mode = #tpu.pipeline_mode<synchronous>, transform_indices = @transform_3, window_bounds = array<i64: 4, 1>}, {transform_indices = @transform_4, window_bounds = array<i64: 1>}, {transform_indices = @transform_5, window_bounds = array<i64: 1, 4, 128>}]} {
    %c0 = arith.constant 0 : index
    %c0_0 = arith.constant 0 : index
    %c0_1 = arith.constant 0 : index
    %0 = vector.load %arg2[%c0, %c0_0, %c0_1] : memref<1x4x128xf32, #tpu.memory_space<vmem>>, vector<1x4x128xf32>
    %1 = vector.shape_cast %0 : vector<1x4x128xf32> to vector<4x128xf32>
    %c0_2 = arith.constant 0 : index
    %c0_3 = arith.constant 0 : index
    %c0_4 = arith.constant 0 : index
    %2 = vector.load %arg3[%c0_2, %c0_3, %c0_4] : memref<1x4x128xf32, #tpu.memory_space<vmem>>, vector<1x4x128xf32>
    %3 = vector.shape_cast %2 : vector<1x4x128xf32> to vector<4x128xf32>
    %c0_5 = arith.constant 0 : index
    %c0_6 = arith.constant 0 : index
    %4 = vector.load %arg4[%c0_5, %c0_6] : memref<4x1xf32, #tpu.memory_space<vmem>>, vector<4x1xf32>
    %5 = vector.broadcast %4 : vector<4x1xf32> to vector<4x128xf32>
    %6 = arith.mulf %1, %5 : vector<4x128xf32>
    %c0_7 = arith.constant 0 : index
    %c0_8 = arith.constant 0 : index
    %7 = vector.load %arg5[%c0_7, %c0_8] : memref<4x1xf32, #tpu.memory_space<vmem>>, vector<4x1xf32>
    %8 = vector.broadcast %7 : vector<4x1xf32> to vector<4x128xf32>
    %9 = arith.mulf %3, %8 : vector<4x128xf32>
    %10 = arith.subf %6, %9 : vector<4x128xf32>
    %cst = arith.constant dense<0.000000e+00> : vector<128xf32>
    %11 = vector.multi_reduction <add>, %10, %cst [0] : vector<4x128xf32> to vector<128xf32>
    %12 = vector.shape_cast %11 : vector<128xf32> to vector<1x128xf32>
    %c0_9 = arith.constant 0 : index
    %13 = memref.load %arg6[%c0_9] : memref<1xf32, #tpu.memory_space<smem>>
    %14 = vector.broadcast %13 : f32 to vector<1x128xf32>
    %15 = arith.addf %12, %14 : vector<1x128xf32>
    %16 = arith.negf %15 : vector<1x128xf32>
    %17 = math.exp %16 : vector<1x128xf32>
    %cst_10 = arith.constant 1.000000e+00 : f32
    %18 = vector.broadcast %cst_10 : f32 to vector<1x128xf32>
    %19 = arith.addf %18, %17 : vector<1x128xf32>
    %20 = arith.divf %18, %19 : vector<1x128xf32>
    %21 = vector.broadcast %20 : vector<1x128xf32> to vector<4x128xf32>
    %22 = arith.mulf %1, %21 : vector<4x128xf32>
    %cst_11 = arith.constant 1.000000e+00 : f32
    %23 = vector.broadcast %cst_11 : f32 to vector<1x128xf32>
    %24 = arith.subf %23, %20 : vector<1x128xf32>
    %25 = vector.broadcast %24 : vector<1x128xf32> to vector<4x128xf32>
    %26 = arith.mulf %3, %25 : vector<4x128xf32>
    %27 = arith.addf %22, %26 : vector<4x128xf32>
    %c0_12 = arith.constant 0 : index
    %c0_13 = arith.constant 0 : index
    %c0_14 = arith.constant 0 : index
    %28 = vector.load %arg7[%c0_12, %c0_13, %c0_14] : memref<1x4x128xf32, #tpu.memory_space<vmem>>, vector<1x4x128xf32>
    %29 = vector.shape_cast %28 : vector<1x4x128xf32> to vector<4x128xf32>
    %30 = vector.shape_cast %27 : vector<4x128xf32> to vector<1x4x128xf32>
    tpu.vector_store %arg7[%c0_12, %c0_13, %c0_14], %30 {strides = array<i32>} : memref<1x4x128xf32, #tpu.memory_space<vmem>>, vector<1x4x128xf32>,
    return
  }
  func.func @transform_0(%arg0: i32, %arg1: i32) -> (i32, i32, i32) {
    %c0_i32 = arith.constant 0 : i32
    %c0_i32_0 = arith.constant 0 : i32
    return %arg0, %c0_i32, %arg1 : i32, i32, i32
  }
  func.func @transform_1(%arg0: i32, %arg1: i32) -> (i32, i32, i32) {
    %c0_i32 = arith.constant 0 : i32
    %c0_i32_0 = arith.constant 0 : i32
    return %arg0, %c0_i32, %arg1 : i32, i32, i32
  }
  func.func @transform_2(%arg0: i32, %arg1: i32) -> (i32, i32) {
    %c0_i32 = arith.constant 0 : i32
    %c0_i32_0 = arith.constant 0 : i32
    %c0_i32_1 = arith.constant 0 : i32
    return %c0_i32, %c0_i32_0 : i32, i32
  }
  func.func @transform_3(%arg0: i32, %arg1: i32) -> (i32, i32) {
    %c0_i32 = arith.constant 0 : i32
    %c0_i32_0 = arith.constant 0 : i32
    %c0_i32_1 = arith.constant 0 : i32
    return %c0_i32, %c0_i32_0 : i32, i32
  }
  func.func @transform_4(%arg0: i32, %arg1: i32) -> i32 {
    %c0_i32 = arith.constant 0 : i32
    %c0_i32_0 = arith.constant 0 : i32
    return %c0_i32 : i32
  }
  func.func @transform_5(%arg0: i32, %arg1: i32) -> (i32, i32, i32) {
    %c0_i32 = arith.constant 0 : i32
    %c0_i32_0 = arith.constant 0 : i32
    return %arg0, %c0_i32, %arg1 : i32, i32, i32
  }
}

</mosaic_0001>

<bundles_post_ra>
// kernel: tpu_custom_call.1
= control target key start
LH: loop header
LB: loop body
LE: loop exit
PB: predicated region body
PF: predicated region fallthrough
CT: control target
= control target key end

     0   :  { %s927_s0 = inlined_call_operand.hbm [shape: f32[2,4,256], index: 0, kind: input, shape index: {}]   ;;  %s928_s1 = inlined_call_operand.vmem [shape: f32[2,4,256], index: 1, kind: input, shape index: {}]   ;;  %s929_s2 = inlined_call_operand.vmem [shape: f32[4,1], index: 2, kind: input, shape index: {}]   ;;  %s930_s3 = inlined_call_operand.vmem [shape: f32[4,1], index: 3, kind: input, shape index: {}]   ;;  %s931_s4 = inlined_call_operand.<no memory space> [shape: f32[1], index: 4, kind: input, shape index: {}]   ;;  %s932_s5 = inlined_call_operand.hbm [shape: f32[2,4,256], index: 5, kind: output, shape index: {}]  }
   0x1   :  { %10 = sst [smem:[#allocation2]] %s931_s4 }
   0x2   :  { %11 = vsyncpa [#allocation4], 0 }
   0x3   :  { %13 = vsyncpa [#allocation4 + $0x1], 0 }
   0x4   :  { %14 = vsyncpa [#allocation5], 0 }
   0x5   :  { %16 = vsyncpa [#allocation5 + $0x1], 0  ;;  %s716_s20 = smov 0   ;;  %s718_s21 = smov 0  }
   0x6   :  { %s720_s22 = smov 0   ;;  %s722_s23 = smov 0  }
   0x7   :  { %s724_s24 = smov 0   ;;  %s726_s25 = smov 0  }
   0x8   :  { %s728_s26 = smov 0   ;;  %s730_s27 = smov 0  }
   0x9 LB: > { %s448_s4 = sadd.s32 4294967295, %s678_s27   ;;  %s449_s28 = sadd.s32 4294967294, %s678_s27   ;;  %s678_s27 = sphi %s730_s27, %s22_s27   ;;  %s674_s26 = sphi %s728_s26, %s954_s26   ;;  %s670_s25 = sphi %s726_s25, %s953_s25   ;;  %s666_s24 = sphi %s724_s24, %s952_s24   ;;  %s662_s23 = sphi %s722_s23, %s951_s23   ;;  %s658_s22 = sphi %s720_s22, %s950_s22   ;;  %s654_s21 = sphi %s718_s21, %s949_s21   ;;  %s650_s20 = sphi %s716_s20, %s948_s20  }
   0xa   : > { %s31_s29 = sadd.s32 1, %s670_s25  ;;  %s34_s30 = sadd.s32 1, %s674_s26 }
   0xb   : > { %p32_p0 = scmp.ge.s32.totalorder %s31_s29, 2  ;;  %s43_s6 = sadd.s32 1, %s658_s22 }
   0xc   : > { %p50_p1 = scmp.ne.s32.totalorder %s658_s22, %s654_s21  ;;  %p51_p2 = scmp.eq.s32.totalorder %s678_s27, 0 }
   0xd   : > { %s956_s29 = smov (%p32_p0, %s31_s29), 0  ;;  %s958_s30 = smov (!%p32_p0, %s34_s30), %s674_s26 }
   0xe   : > { %s39_s7 = ssub.s32 %s670_s25, %s956_s29  ;;  %p769_p3 = por %p51_p2, %p50_p1 }
   0xf   : > { %p36_p4 = scmp.ge.s32.totalorder %s958_s30, 2  ;;  %p56_p5 = scmp.ne.s32.totalorder %s654_s21, %s650_s20 }
  0x10   : > { %p57_p6 = scmp.eq.s32.totalorder %s448_s4, 0  ;;  %p173_p7 = scmp.eq.s32.totalorder %s448_s4, 3 }
  0x11   : > { %s960_s30 = smov (%p36_p4, %s958_s30), 0  ;;  %p179_p10 = scmp.eq.s32.totalorder %s449_s28, 3 }
  0x12   : > { %937 = sst [smem:[#allocation9_spill]] %s960_s30  ;;  %p777_p8 = por %p57_p6, %p56_p5 }
  0x13   : > { %p781_p9 = por %p173_p7, %p50_p1  ;;  %s38_s11 = ssub.s32 %s674_s26, %s960_s30 }
  0x14   : > { %s40_s12 = sor.u32 %s39_s7, %s38_s11  ;;  %p787_p12 = por %p179_p10, %p56_p5 }
  0x15   : > { %s939_s10 = scalar_select %p781_p9, 1, 0 }
  0x16   : > { %p41_p11 = scmp.eq.s32.totalorder %s40_s12, 0  ;;  %p478_p13 = scmp.lt.s32.totalorder %s678_s27, 4 }
  0x17   : > { %s940_s13 = scalar_select %p787_p12, 1, 0 }
  0x18   : > { %s208_s14 = sand.u32 1, %s658_s22   ;;  %s453_s17 = sshll.u32 %s674_s26, 1 }
  0x19   : > { %s794_s15 = scalar_select %p41_p11, %s658_s22, %s43_s6  }
  0x1a   : > { %s452_s16 = sshll.u32 %s208_s14, 2  ;;  %s217_s18 = sadd.s32 %s670_s25, %s453_s17 }
  0x1b   : > { %s212_s19 = scalar_lea.vmem [#allocation3], %s452_s16  ;;  %s454_s30 = sshll.u32 %s217_s18, 6 }
  0x1c   : > { %s221_s4 = sshll.u32 %s212_s19, 4  ;;  %s803_s11 = scalar_lea.hbm %s927_s0, %s454_s30  ;;  %s798_s4 = int_to_ptr.vmem [resolvable:$true] %s221_s4 }
  0x1d   : > { %p807_p0 = pnand %p478_p13, %p769_p3  ;;  %s209_s12 = scalar_lea.sflag [#allocation4], %s208_s14 }
  0x1e   : > { %s550_s16 = scalar_lea.hbm %s803_s11, 64  ;;  %s555_s17 = scalar_lea.hbm %s927_s0, 256 }
  0x1f   : > { %p551_p4 = scmp.ne.s32.totalorder %s803_s11, %s550_s16  ;;  %p552_p5 = pneg %p807_p0 }
  0x20   : > { %p556_p3 = scmp.lt.u32.totalorder %s803_s11, %s927_s0  ;;  %p557_p10 = scmp.lt.u32.totalorder %s555_s17, %s550_s16 }
  0x21   : > { %p553_p6 = pnand %p552_p5, %p551_p4  ;;  %p559_p13 = scmp.lt.u32.totalorder %s550_s16, %s803_s11 }
  0x22   : > { %p558_p11 = por %p557_p10, %p556_p3 }
  0x23   : > { %p554_p7 = pneg %p553_p6 }
  0x24   : > { %p560_p1 = por %p559_p13, %p558_p11 }
  0x26   : > { %p561_p2 = pnand %p560_p1, %p554_p7 }
  0x28   : > { %564 = shalt.err (!%p561_p2)
}
  0x29   : > { %s565_s14 = scalar_lea.vmem %s798_s4, 64  ;;  %s680_s28 = smov [#allocation3]  }
  0x2a   : > { %p566_p4 = scmp.ne.s32.totalorder %s798_s4, %s565_s14  ;;  %s570_s7 = sshll.u32 %s680_s28, 4  ;;  %s571_s7 = int_to_ptr.vmem [resolvable:$false] %s570_s7 }
  0x2b   : > { %s572_s30 = scalar_lea.vmem %s571_s7, 128  ;;  %p573_p9 = scmp.lt.s32.totalorder %s798_s4, %s571_s7 }
  0x2c   : > { %p568_p6 = pnand %p566_p4, %p552_p5  ;;  %p574_p3 = scmp.lt.s32.totalorder %s572_s30, %s565_s14 }
  0x2e   : > { %p569_p12 = pneg %p568_p6  ;;  %p575_p10 = por %p574_p3, %p573_p9 }
  0x30   : > { %p576_p11 = pnand %p575_p10, %p569_p12 }
  0x32   : > { %579 = shalt.err (!%p576_p11)
}
  0x33   : > { %473 = dma.hbm_to_vmem [thread:$0]  (!%p807_p0), %s803_s11, 64, %s798_s4, %s209_s12  }
  0x34   : > { %p942_p1 = scmp.lt.s32.totalorder %s678_s27, 5  ;;  %p943_p2 = scmp.ge.s32.totalorder %s678_s27, 1 }
  0x36   : > { %p238_p5 = pnand %p943_p2, %p942_p1 }
  0x37   : > { %s843_s16 = sand.u32 (!%p238_p5), 1, %s654_s21  }
  0x38   : > { %241 = sbr.rel (%p238_p5) target bundleno = 263 (0x107), region = 40  ;;  %s935_s8 = sshll.u32 (!%p238_p5), %s843_s16, 2 }
  0x39   : > { %s244_s17 = scalar_lea.sflag (!%p238_p5), [#allocation4], %s843_s16  ;;  %s247_s6 = scalar_lea.vmem (!%p238_p5), [#allocation3], %s935_s8 }
  0x3f   : > { %641 = dma.done.wait (%p777_p8), %s244_s17, 64  }
  0x40   : > { %643 = vsyncadd (%p777_p8), %s244_s17, 4294967232  ;;  %v681_v0 = vmov 0   ;;  %v292_v1 = vld [vmem:[%s929_s2] sm:$0xf]  ;;  %p282_p9 = scmp.lt.s32.totalorder %s666_s24, 1  ;;  %p284_p12 = scmp.lt.s32.totalorder %s662_s23, 1 }
  0x41   : > { %545 = vset.pattern.permute.xlu0 %v681_v0  ;;  %v299_v2 = vld [vmem:[%s930_s3] sm:$0xf]  ;;  %vm307_vm0 = vcmask 1043456   ;;  %s315_s4 = sld [smem:[#allocation2]]  ;;  %s944_s12 = sshll.u32 %s843_s16, 2 }
  0x42   : > { %295 = vperm.xlu0 %545, %v292_v1   ;;  %s283_s9 = scalar_select %p282_p9, %s666_s24, 1  ;;  %v290_v4 = vld [vmem:[%s247_s6] sm:$0xf] }
  0x43   : > { %s285_s19 = scalar_select %p284_p12, %s662_s23, 1 }
  0x44   : > { %s458_s14 = sshll.u32 %s283_s9, 1  ;;  %s281_s18 = scalar_lea.vmem [#allocation6], %s944_s12 }
  0x45   : > { %s287_s28 = sadd.s32 %s458_s14, %s285_s19  ;;  %s345_s9 = sshll.u32 %s281_s18, 4  ;;  %s875_s9 = int_to_ptr.vmem [resolvable:$true] %s345_s9 }
  0x46   : > { %302 = vperm.xlu0 %545, %v299_v2   ;;  %s459_s7 = sshll.u32 %s287_s28, 2  ;;  %p945_p0 = scmp.ne.s32.totalorder %s939_s10, 0 }
  0x47   : > { %s289_s8 = scalar_lea.vmem %s928_s1, %s459_s7  ;;  %v316_v16 = vstv %s315_s4  ;;  %s682_s7 = smov [#allocation6]  }
  0x48   : > { %v291_v5 = vld [vmem:[%s289_s8] sm:$0xf]  ;;  %s462_s8 = sshll.u32 %s666_s24, 1  ;;  %s580_s24 = scalar_lea.vmem %s875_s9, 64 }
  0x49   : > { %s341_s6 = sadd.s32 %s662_s23, %s462_s8  ;;  %s330_s23 = scalar_lea.sflag [#allocation5], %s843_s16 }
  0x4a   : > { %s463_s11 = sshll.u32 %s341_s6, 6  ;;  %p581_p8 = scmp.ne.s32.totalorder %s875_s9, %s580_s24 }
  0x4b   : > { %s873_s28 = scalar_lea.hbm %s932_s5, %s463_s11  ;;  %s584_s30 = sshll.u32 %s682_s7, 4  ;;  %s585_s30 = int_to_ptr.vmem [resolvable:$false] %s584_s30 }
  0x4c   : > { %p582_p7 = pnand %p581_p8, %p945_p0  ;;  %s586_s17 = scalar_lea.vmem %s585_s30, 128 }
  0x4d   : > { %p587_p4 = scmp.lt.s32.totalorder %s875_s9, %s585_s30  ;;  %p588_p6 = scmp.lt.s32.totalorder %s586_s17, %s580_s24 }
  0x4e   : > { %p583_p13 = pneg %p582_p7 }
  0x4f   : > { %p589_p3 = por %p588_p6, %p587_p4 }
  0x51   : > { %p590_p10 = pnand %p589_p3, %p583_p13 }
  0xc1   : > { %v296_v3 = vpop.permute.xlu0 %295 }
  0xc2   : > { %v298_v7 = vmul.f32 %v296_v3, %v290_v4 }
  0xc5   : > { %v303_v6 = vpop.permute.xlu0 %302 }
  0xc6   : > { %v305_v8 = vmul.f32 %v303_v6, %v291_v5 }
  0xc8   : > { %v306_v9 = vsub.f32 %v298_v7, %v305_v8 }
  0xca   : > { %v308_v10 = vsel %vm307_vm0, %v306_v9, 0.0 }
  0xcb   : > { %v309_v11 = vrot.slane %v308_v10, 4 }
  0xcd   : > { %v310_v12 = vadd.f32 %v309_v11, %v308_v10 }
  0xcf   : > { %v311_v13 = vrot.slane %v310_v12, 2 }
  0xd1   : > { %v312_v14 = vadd.f32 %v311_v13, %v310_v12 }
  0xd3   : > { %v313_v15 = vrot.slane %v312_v14, 1 }
  0xd5   : > { %v314_v17 = vadd.f32 %v313_v15, %v312_v14 }
  0xd7   : > { %v317_v18 = vadd.f32 %v316_v16, %v314_v17 }
  0xd9   : > { %v460_v19 = vmul.f32 -1.442695, %v317_v18 }
  0xdb   : > { %546 = vpow2.f32 %v460_v19 }
  0xe5   : > { %v547_v20 = vpop.eup %546 }
  0xe6   : > { %v321_v21 = vadd.f32 1.0, %v547_v20 }
  0xe8   : > { %548 = vrcp.f32 %v321_v21 }
  0xf2   : > { %v549_v22 = vpop.eup %548 }
  0xf3   : > { %v325_v23 = vsub.f32 1.0, %v549_v22  ;;  %v324_v24 = vmul.f32 %v549_v22, %v290_v4 }
  0xf5   : > { %v326_v25 = vmul.f32 %v325_v23, %v291_v5 }
  0xf7   : > { %v327_v26 = vadd.f32 %v326_v25, %v324_v24 }
  0xf9   : > { %328 = vst [vmem:[%s281_s18] sm:$0xf] %v327_v26 }
  0xfa   : > { %593 = shalt.err (!%p590_p10)
}
  0xfb   : > { %s594_s16 = scalar_lea.hbm %s873_s28, 64  ;;  %s598_s6 = scalar_lea.hbm %s932_s5, 256 }
  0xfc   : > { %p595_p11 = scmp.ne.s32.totalorder %s873_s28, %s594_s16  ;;  %p599_p5 = scmp.lt.u32.totalorder %s873_s28, %s932_s5 }
  0xfd   : > { %p600_p9 = scmp.lt.u32.totalorder %s598_s6, %s594_s16  ;;  %p602_p8 = scmp.lt.u32.totalorder %s594_s16, %s873_s28 }
  0xfe   : > { %p596_p1 = pnand %p595_p11, %p945_p0 }
  0xff   : > { %p601_p12 = por %p600_p9, %p599_p5 }
 0x100   : > { %p597_p2 = pneg %p596_p1 }
 0x101   : > { %p603_p7 = por %p602_p8, %p601_p12 }
 0x103   : > { %p604_p13 = pnand %p603_p7, %p597_p2 }
 0x105   : > { %607 = shalt.err (!%p604_p13)
}
 0x106   : > { %468 = dma.vmem_to_hbm [thread:$0]  (%p945_p0), %s875_s9, 64, %s873_s28, %s330_s23  }
 0x107 PF: > { %p479_p4 = scmp.ge.s32.totalorder %s678_s27, 2  ;;  %s357_s18 = sand.u32 1, %s650_s20  }
 0x108   : > { %p946_p6 = scmp.ne.s32.totalorder %s940_s13, 0  ;;  %s358_s19 = scalar_lea.sflag [#allocation5], %s357_s18 }
 0x10a   : > { %p475_p3 = pnand %p479_p4, %p946_p6 }
 0x10c   : > { %645 = dma.done.wait (!%p475_p3), %s358_s19, 64  }
 0x10d   : > { %647 = vsyncadd (!%p475_p3), %s358_s19, 4294967232  ;;  %s22_s27 = sadd.s32 1, %s678_s27   ;;  %s947_s10 = sld [smem:[#allocation9_spill]] }
 0x10e   : > { %p19_p10 = scmp.ge.s32.totalorder %s22_s27, 6   ;;  %s948_s20 = smov %s654_s21 }
 0x10f   : > { %s949_s21 = smov %s658_s22  ;;  %s950_s22 = smov %s794_s15 }
 0x110   : > { %s951_s23 = smov %s670_s25  ;;  %s952_s24 = smov %s674_s26 }
 0x111   : > { %s953_s25 = smov %s956_s29  ;;  %21 = sbr.rel (!%p19_p10) target bundleno = 9 (0x9), region = 88 }
 0x113   : > { %s954_s26 = smov %s947_s10 }
 0x118   :  { %363 = vsyncpa [#allocation4], 1 }
 0x119   :  { %365 = vsyncpa [#allocation4 + $0x1], 1 }
 0x11a   :  { %366 = vsyncpa [#allocation5], 1 }
 0x11b   :  { %368 = vsyncpa [#allocation5 + $0x1], 1 }

</bundles_post_ra>
